<compile_context>
chip_gen: v6e
topology: v6e:2x2x1
jax: 0.10.0
libtpu: 0.0.40
codegen_flags: <defaults>
</compile_context>

<pallas_src>
import jax
import jax.numpy as jnp
from jax import lax
from jax.experimental import pallas as pl
from jax.experimental.pallas import tpu as pltpu


def _round_up(v, m):
    return (v + m - 1) // m * m


def _num_tensorcores():
    """Best-effort TensorCore count of the local chip (v7x: 2, v5e/v6e: 1)."""
    try:
        info = pltpu.get_tpu_info()
        for name in ("num_cores", "tensorcore_count", "num_tensorcores"):
            n = getattr(info, name, None)
            if n:
                return max(1, int(n))
    except Exception:
        pass
    try:
        n = getattr(jax.devices()[0], "num_cores", None)
        if n:
            return max(1, int(n))
    except Exception:
        pass
    return 1


def _vmem_budget_bytes():
    """Per-grid-step VMEM budget for one batch block (generation aware)."""
    try:
        cap = int(pltpu.get_tpu_info().vmem_capacity_bytes)
    except Exception:
        cap = 64 << 20
    return max(2 << 20, min(cap // 8, 12 << 20))


def _pick_batch_block(n_batch, bytes_per_image, budget_bytes, min_steps=1, max_block=8):
    """Largest divisor of n_batch that fits the VMEM budget; on multi-TC chips keep
    at least `min_steps` grid steps so both TensorCores get work."""
    candidates = [d for d in range(1, min(n_batch, max_block) + 1)
                  if n_batch % d == 0 and d * bytes_per_image <= budget_bytes]
    if not candidates:
        return 1
    good = [d for d in candidates if n_batch // d >= min_steps]
    return max(good) if good else max(candidates)


def _make_kernel(Nb, C_in, C_out, Cp_out, Kc, H, W, halo):
    """Fully fused grouped-3x3 + 1x1 conv: one MXU matmul per grid step."""
    HW = H * W
    KH = KW = 3
    Kp = KH * KW * Kc                    # stacked contraction dim (tap-major)

    def kernel(x_ref, bmat_ref, bias_ref, mask_ref, o_ref, xs_ref, rhs_ref):
        # x_ref   : (Nb, C_in, HW)          input block, spatial flattened (stride W)
        # bmat_ref: (Cp_out, Kp)            fused (pointwise @ depthwise) weights
        # bias_ref: (Cp_out, 1)             fused bias  (W_pw @ b_dw + b_pw)
        # mask_ref: (2, HW)                 column masks [kw=0 taps, kw=2 taps]
        # o_ref   : (Nb, C_out, HW)         output block (compact, lane-dense)
        # xs_ref  : (Nb, C_in, HW + 2*halo) zero-halo staging of the images (VMEM)
        # rhs_ref : (Kp, Nb*HW)             stacked shifted-slab RHS (VMEM)
        f32 = jnp.float32

        # Hoisted constants / broadcasts (never inside the loops).
        zero_halo = jnp.zeros((C_in, halo), f32)
        mask_l = jnp.broadcast_to(mask_ref[0:1, :], (C_in, HW))
        mask_r = jnp.broadcast_to(mask_ref[1:2, :], (C_in, HW))

        # Stage every image of the block into VMEM with a zero halo on both sides
        # (handles the vertical out-of-range taps without any HBM padding pass).
        for b in range(Nb):
            xs_ref[b, :, 0:halo] = zero_halo
            xs_ref[b, :, halo + HW:halo + HW + halo] = zero_halo
            xs_ref[b, :, halo:halo + HW] = x_ref[b].astype(f32)

        # Build the stacked RHS.  Row block t holds the tap-(kh,kw) shifted slab of
        # every image; column block b holds image b (lane offset b*HW, 128-aligned
        # when HW % 128 == 0).  Each tap block is padded to Kc (= round_up(C_in, 8))
        # rows so all sublane stores are tile-aligned.
        if Kc > C_in:
            rhs_ref[...] = jnp.zeros((Kp, Nb * HW), f32)   # zero the pad rows once/step
        for b in range(Nb):
            for t in range(KH * KW):
                kh, kw = t // KW, t % KW
                off = halo + (kh - 1) * W + (kw - 1)       # static lane offset
                slab = xs_ref[b, :, off:off + HW]
                if kw == 0:                                # wrong-row wrap at wo == 0
                    slab = slab * mask_l
                elif kw == 2:                              # wrong-row wrap at wo == W-1
                    slab = slab * mask_r
                rhs_ref[t * Kc:t * Kc + C_in, b * HW:(b + 1) * HW] = slab

        # ONE fused MXU matmul (depthwise 3x3 grouped + pointwise 1x1 + both biases).
        out = jnp.dot(bmat_ref[...], rhs_ref[...], preferred_element_type=f32)
        out = out + bias_ref[...]

        # Lane-dense compact stores (no junk columns, no channel padding in HBM).
        for b in range(Nb):
            o_ref[b] = out[:C_out, b * HW:(b + 1) * HW].astype(o_ref.dtype)

    return kernel


def dwsep_conv_pallas(x, w_dw, b_dw, w_pw, b_pw, padding=1, batch_block=None):
    """forward(x) of DepthWiseSeparableConv; NCHW in / NCHW out."""
    out_dtype = x.dtype
    N, C_in, H0, W0 = x.shape
    C_out = w_pw.shape[0]
    cpg = w_dw.shape[1]                          # depthwise in-channels per group
    assert C_in % cpg == 0
    groups = C_in // cpg
    assert w_dw.shape[0] == C_in, "depthwise layer must have C_in output channels"
    opg = C_in // groups
    KH = KW = 3
    p = int(padding)

    # Reduce every padding to the p == 1 case (output stride == input stride, so no
    # junk columns and no wrapper pad/slice HBM pass for the default padding=1).
    crop = (p == 0)
    if p >= 2:
        x = jnp.pad(x, ((0, 0), (0, 0), (p - 1, p - 1), (p - 1, p - 1)))
    N, _, H, W = x.shape
    HW = H * W

    halo = _round_up(W + 1, 128)                 # aligned zero halo in the VMEM scratch
    Cp_out = _round_up(C_out, 8)
    Kc = _round_up(C_in, 8)                      # per-tap K rows (tile aligned)
    Kp = KH * KW * Kc

    # Free metadata reshape; channels are NOT zero-padded in HBM.
    xf = x.astype(jnp.float32).reshape(N, C_in, HW)

    # ---- fuse depthwise (grouped 3x3) and pointwise (1x1) weights ---------------
    # Dense block-diagonal per-tap depthwise matrix A[m, c, t].
    wd = w_dw.astype(jnp.float32).reshape(groups, opg, cpg, KH * KW)
    A = jnp.einsum("goct,gh->gohct", wd, jnp.eye(groups, dtype=jnp.float32))
    A = A.reshape(C_in, C_in, KH * KW)
    wpw = w_pw.astype(jnp.float32).reshape(C_out, C_in)
    # B[o, t, c] = sum_m W_pw[o, m] * A[m, c, t]; taps stacked along K (tap-major).
    B = jnp.einsum("om,mct->otc", wpw, A)                       # (C_out, 9, C_in)
    B = jnp.pad(B, ((0, Cp_out - C_out), (0, 0), (0, Kc - C_in)))
    B = B.reshape(Cp_out, Kp)
    bias = wpw @ b_dw.astype(jnp.float32) + b_pw.astype(jnp.float32)
    bias = jnp.pad(bias, (0, Cp_out - C_out)).reshape(Cp_out, 1)

    # Column masks for the horizontally shifted taps (kw = 0 / kw = 2).
    col = jnp.arange(HW, dtype=jnp.int32) % W
    masks = jnp.stack([(col > 0), (col < W - 1)]).astype(jnp.float32)   # (2, HW)

    # ---- generation-aware batch blocking ----------------------------------------
    bytes_per_image = 4 * (2 * C_in * HW              # input block (double-buffered)
                           + C_in * (HW + 2 * halo)   # halo staging scratch
                           + Kp * HW                  # stacked RHS scratch
                           + 2 * Cp_out * HW)         # output block (double-buffered)
    min_steps = 2 if _num_tensorcores() > 1 else 1
    Nb = batch_block if batch_block is not None else _pick_batch_block(
        N, bytes_per_image, _vmem_budget_bytes(), min_steps)
    assert N % Nb == 0, (N, Nb)
    grid = (N // Nb,)

    est_vmem = Nb * bytes_per_image + 4 * (Cp_out * Kp + Cp_out + 2 * HW)
    vmem_limit = None
    if est_vmem > (12 << 20):
        vmem_limit = int(min(_round_up(est_vmem * 5 // 4, 1 << 20), 32 << 20))

    kernel = _make_kernel(Nb, C_in, C_out, Cp_out, Kc, H, W, halo)

    out = pl.pallas_call(
        kernel,
        out_shape=jax.ShapeDtypeStruct((N, C_out, HW), out_dtype),
        grid=grid,
        in_specs=[
            pl.BlockSpec((Nb, C_in, HW), lambda n: (n, 0, 0)),
            pl.BlockSpec((Cp_out, Kp), lambda n: (0, 0)),
            pl.BlockSpec((Cp_out, 1), lambda n: (0, 0)),
            pl.BlockSpec((2, HW), lambda n: (0, 0)),
        ],
        out_specs=pl.BlockSpec((Nb, C_out, HW), lambda n: (n, 0, 0)),
        scratch_shapes=[
            pltpu.VMEM((Nb, C_in, HW + 2 * halo), jnp.float32),
            pltpu.VMEM((Kp, Nb * HW), jnp.float32),
        ],
        compiler_params=pltpu.CompilerParams(
            dimension_semantics=("parallel",),
            vmem_limit_bytes=vmem_limit),
    )(xf, B, bias, masks)

    out = out.reshape(N, C_out, H, W)            # free metadata reshape back to NCHW
    if crop:                                     # padding == 0: p=1 result cropped by 1
        out = out[:, :, 1:H - 1, 1:W - 1]
    return out


def dwsep_conv_ref(x, w_dw, b_dw, w_pw, b_pw, padding, groups):
    dn = ("NCHW", "OIHW", "NCHW")
    y = lax.conv_general_dilated(
        x, w_dw, (1, 1), [(padding, padding)] * 2,
        dimension_numbers=dn, feature_group_count=groups)
    y = y + b_dw[None, :, None, None]
    z = lax.conv_general_dilated(
        y, w_pw, (1, 1), [(0, 0)] * 2, dimension_numbers=dn)
    z = z + b_pw[None, :, None, None]
    return z


if __name__ == "__main__":
    # Module config: in_channels=4, out_channels=8, padding=1
    #   -> depthwise_layer groups = out_channels / in_channels = 2
    in_channels, out_channels, padding = 4, 8, 1
    groups = out_channels // in_channels
    N, H, W = 2, 16, 16

    key = jax.random.PRNGKey(0)
    k_x, k_wd, k_bd, k_wp, k_bp = jax.random.split(key, 5)

    x = jax.random.normal(k_x, (N, in_channels, H, W), dtype=jnp.float32)
    # Conv2d(4, 4, k=3, groups=2) weight: (4, 4//2, 3, 3)
    w_dw = 0.1 * jax.random.normal(k_wd, (in_channels, in_channels // groups, 3, 3), jnp.float32)
    b_dw = 0.1 * jax.random.normal(k_bd, (in_channels,), jnp.float32)
    # Conv2d(4, 8, k=1) weight: (8, 4, 1, 1)
    w_pw = 0.1 * jax.random.normal(k_wp, (out_channels, in_channels, 1, 1), jnp.float32)
    b_pw = 0.1 * jax.random.normal(k_bp, (out_channels,), jnp.float32)

    out = dwsep_conv_pallas(x, w_dw, b_dw, w_pw, b_pw, padding=padding)
    out = jax.block_until_ready(out)

    ref = dwsep_conv_ref(x, w_dw, b_dw, w_pw, b_pw, padding, groups)
    assert out.shape == (N, out_channels, H, W), out.shape
    # Tolerance allows for MXU f32 multi-pass accumulation / summation-order diffs;
    # real bugs (tap offset, group wiring, mask, bias fusion) would exceed 1e-2.
    max_err = float(jnp.max(jnp.abs(out - ref)))
    assert jnp.allclose(out, ref, rtol=1e-3, atol=1e-3), max_err

    print("KERNEL_OK")
</pallas_src>

<mosaic_0001>
module attributes {stable_mosaic.version = 11 : i64} {
  func.func @kernel(%arg0: i32, %arg1: memref<2x4x256xf32, #tpu.memory_space<vmem>>, %arg2: memref<8x72xf32, #tpu.memory_space<vmem>>, %arg3: memref<8x1xf32, #tpu.memory_space<vmem>>, %arg4: memref<2x256xf32, #tpu.memory_space<vmem>>, %arg5: memref<2x8x256xf32, #tpu.memory_space<vmem>>, %arg6: memref<2x4x512xf32, #tpu.memory_space<vmem>>, %arg7: memref<72x512xf32, #tpu.memory_space<vmem>>) attributes {dimension_semantics = [#tpu.dimension_semantics<parallel>], iteration_bounds = array<i64: 1>, scalar_prefetch = 0 : i64, scratch_operands = 2 : i64, tpu.core_type = #tpu.core_type<tc>, window_params = [{transform_indices = @transform_0, window_bounds = array<i64: 2, 4, 256>}, {pipeline_mode = #tpu.pipeline_mode<synchronous>, transform_indices = @transform_1, window_bounds = array<i64: 8, 72>}, {pipeline_mode = #tpu.pipeline_mode<synchronous>, transform_indices = @transform_2, window_bounds = array<i64: 8, 1>}, {pipeline_mode = #tpu.pipeline_mode<synchronous>, transform_indices = @transform_3, window_bounds = array<i64: 2, 256>}, {transform_indices = @transform_4, window_bounds = array<i64: 2, 8, 256>}]} {
    %cst = arith.constant 0.000000e+00 : f32
    %0 = vector.broadcast %cst : f32 to vector<4x128xf32>
    %c0 = arith.constant 0 : index
    %c0_0 = arith.constant 0 : index
    %1 = vector.load %arg4[%c0, %c0_0] : memref<2x256xf32, #tpu.memory_space<vmem>>, vector<1x256xf32>
    %2 = vector.shape_cast %1 : vector<1x256xf32> to vector<1x256xf32>
    %3 = vector.broadcast %2 : vector<1x256xf32> to vector<4x256xf32>
    %c1 = arith.constant 1 : index
    %c0_1 = arith.constant 0 : index
    %4 = vector.load %arg4[%c1, %c0_1] : memref<2x256xf32, #tpu.memory_space<vmem>>, vector<1x256xf32>
    %5 = vector.shape_cast %4 : vector<1x256xf32> to vector<1x256xf32>
    %6 = vector.broadcast %5 : vector<1x256xf32> to vector<4x256xf32>
    %c0_2 = arith.constant 0 : index
    %c0_3 = arith.constant 0 : index
    %c0_4 = arith.constant 0 : index
    %7 = vector.load %arg6[%c0_2, %c0_3, %c0_4] : memref<2x4x512xf32, #tpu.memory_space<vmem>>, vector<1x4x128xf32>
    %8 = vector.shape_cast %7 : vector<1x4x128xf32> to vector<4x128xf32>
    %9 = vector.shape_cast %0 : vector<4x128xf32> to vector<1x4x128xf32>
    tpu.vector_store %arg6[%c0_2, %c0_3, %c0_4], %9 {strides = array<i32>} : memref<2x4x512xf32, #tpu.memory_space<vmem>>, vector<1x4x128xf32>,
    %c0_5 = arith.constant 0 : index
    %c0_6 = arith.constant 0 : index
    %c384 = arith.constant 384 : index
    %10 = vector.load %arg6[%c0_5, %c0_6, %c384] : memref<2x4x512xf32, #tpu.memory_space<vmem>>, vector<1x4x128xf32>
    %11 = vector.shape_cast %10 : vector<1x4x128xf32> to vector<4x128xf32>
    %12 = vector.shape_cast %0 : vector<4x128xf32> to vector<1x4x128xf32>
    tpu.vector_store %arg6[%c0_5, %c0_6, %c384], %12 {strides = array<i32>} : memref<2x4x512xf32, #tpu.memory_space<vmem>>, vector<1x4x128xf32>,
    %c0_7 = arith.constant 0 : index
    %c0_8 = arith.constant 0 : index
    %c0_9 = arith.constant 0 : index
    %13 = vector.load %arg1[%c0_7, %c0_8, %c0_9] : memref<2x4x256xf32, #tpu.memory_space<vmem>>, vector<1x4x256xf32>
    %14 = vector.shape_cast %13 : vector<1x4x256xf32> to vector<4x256xf32>
    %c0_10 = arith.constant 0 : index
    %c0_11 = arith.constant 0 : index
    %c128 = arith.constant 128 : index
    %15 = vector.load %arg6[%c0_10, %c0_11, %c128] : memref<2x4x512xf32, #tpu.memory_space<vmem>>, vector<1x4x256xf32>
    %16 = vector.shape_cast %15 : vector<1x4x256xf32> to vector<4x256xf32>
    %17 = vector.shape_cast %14 : vector<4x256xf32> to vector<1x4x256xf32>
    tpu.vector_store %arg6[%c0_10, %c0_11, %c128], %17 {strides = array<i32>} : memref<2x4x512xf32, #tpu.memory_space<vmem>>, vector<1x4x256xf32>,
    %c1_12 = arith.constant 1 : index
    %c0_13 = arith.constant 0 : index
    %c0_14 = arith.constant 0 : index
    %18 = vector.load %arg6[%c1_12, %c0_13, %c0_14] : memref<2x4x512xf32, #tpu.memory_space<vmem>>, vector<1x4x128xf32>
    %19 = vector.shape_cast %18 : vector<1x4x128xf32> to vector<4x128xf32>
    %20 = vector.shape_cast %0 : vector<4x128xf32> to vector<1x4x128xf32>
    tpu.vector_store %arg6[%c1_12, %c0_13, %c0_14], %20 {strides = array<i32>} : memref<2x4x512xf32, #tpu.memory_space<vmem>>, vector<1x4x128xf32>,
    %c1_15 = arith.constant 1 : index
    %c0_16 = arith.constant 0 : index
    %c384_17 = arith.constant 384 : index
    %21 = vector.load %arg6[%c1_15, %c0_16, %c384_17] : memref<2x4x512xf32, #tpu.memory_space<vmem>>, vector<1x4x128xf32>
    %22 = vector.shape_cast %21 : vector<1x4x128xf32> to vector<4x128xf32>
    %23 = vector.shape_cast %0 : vector<4x128xf32> to vector<1x4x128xf32>
    tpu.vector_store %arg6[%c1_15, %c0_16, %c384_17], %23 {strides = array<i32>} : memref<2x4x512xf32, #tpu.memory_space<vmem>>, vector<1x4x128xf32>,
    %c1_18 = arith.constant 1 : index
    %c0_19 = arith.constant 0 : index
    %c0_20 = arith.constant 0 : index
    %24 = vector.load %arg1[%c1_18, %c0_19, %c0_20] : memref<2x4x256xf32, #tpu.memory_space<vmem>>, vector<1x4x256xf32>
    %25 = vector.shape_cast %24 : vector<1x4x256xf32> to vector<4x256xf32>
    %c1_21 = arith.constant 1 : index
    %c0_22 = arith.constant 0 : index
    %c128_23 = arith.constant 128 : index
    %26 = vector.load %arg6[%c1_21, %c0_22, %c128_23] : memref<2x4x512xf32, #tpu.memory_space<vmem>>, vector<1x4x256xf32>
    %27 = vector.shape_cast %26 : vector<1x4x256xf32> to vector<4x256xf32>
    %28 = vector.shape_cast %25 : vector<4x256xf32> to vector<1x4x256xf32>
    tpu.vector_store %arg6[%c1_21, %c0_22, %c128_23], %28 {strides = array<i32>} : memref<2x4x512xf32, #tpu.memory_space<vmem>>, vector<1x4x256xf32>,
    %cst_24 = arith.constant 0.000000e+00 : f32
    %29 = vector.broadcast %cst_24 : f32 to vector<72x512xf32>
    %c0_25 = arith.constant 0 : index
    %c0_26 = arith.constant 0 : index
    %30 = vector.load %arg7[%c0_25, %c0_26] : memref<72x512xf32, #tpu.memory_space<vmem>>, vector<72x512xf32>
    tpu.vector_store %arg7[%c0_25, %c0_26], %29 {strides = array<i32>} : memref<72x512xf32, #tpu.memory_space<vmem>>, vector<72x512xf32>,
    %c0_27 = arith.constant 0 : index
    %c0_28 = arith.constant 0 : index
    %c111 = arith.constant 111 : index
    %31 = vector.load %arg6[%c0_27, %c0_28, %c111] : memref<2x4x512xf32, #tpu.memory_space<vmem>>, vector<1x4x256xf32>
    %32 = vector.shape_cast %31 : vector<1x4x256xf32> to vector<4x256xf32>
    %33 = arith.mulf %32, %3 : vector<4x256xf32>
    %c0_29 = arith.constant 0 : index
    %c0_30 = arith.constant 0 : index
    %34 = vector.load %arg7[%c0_29, %c0_30] : memref<72x512xf32, #tpu.memory_space<vmem>>, vector<4x256xf32>
    tpu.vector_store %arg7[%c0_29, %c0_30], %33 {strides = array<i32>} : memref<72x512xf32, #tpu.memory_space<vmem>>, vector<4x256xf32>,
    %c0_31 = arith.constant 0 : index
    %c0_32 = arith.constant 0 : index
    %c112 = arith.constant 112 : index
    %35 = vector.load %arg6[%c0_31, %c0_32, %c112] : memref<2x4x512xf32, #tpu.memory_space<vmem>>, vector<1x4x256xf32>
    %36 = vector.shape_cast %35 : vector<1x4x256xf32> to vector<4x256xf32>
    %c8 = arith.constant 8 : index
    %c0_33 = arith.constant 0 : index
    %37 = vector.load %arg7[%c8, %c0_33] : memref<72x512xf32, #tpu.memory_space<vmem>>, vector<4x256xf32>
    tpu.vector_store %arg7[%c8, %c0_33], %36 {strides = array<i32>} : memref<72x512xf32, #tpu.memory_space<vmem>>, vector<4x256xf32>,
    %c0_34 = arith.constant 0 : index
    %c0_35 = arith.constant 0 : index
    %c113 = arith.constant 113 : index
    %38 = vector.load %arg6[%c0_34, %c0_35, %c113] : memref<2x4x512xf32, #tpu.memory_space<vmem>>, vector<1x4x256xf32>
    %39 = vector.shape_cast %38 : vector<1x4x256xf32> to vector<4x256xf32>
    %40 = arith.mulf %39, %6 : vector<4x256xf32>
    %c16 = arith.constant 16 : index
    %c0_36 = arith.constant 0 : index
    %41 = vector.load %arg7[%c16, %c0_36] : memref<72x512xf32, #tpu.memory_space<vmem>>, vector<4x256xf32>
    tpu.vector_store %arg7[%c16, %c0_36], %40 {strides = array<i32>} : memref<72x512xf32, #tpu.memory_space<vmem>>, vector<4x256xf32>,
    %c0_37 = arith.constant 0 : index
    %c0_38 = arith.constant 0 : index
    %c127 = arith.constant 127 : index
    %42 = vector.load %arg6[%c0_37, %c0_38, %c127] : memref<2x4x512xf32, #tpu.memory_space<vmem>>, vector<1x4x256xf32>
    %43 = vector.shape_cast %42 : vector<1x4x256xf32> to vector<4x256xf32>
    %44 = arith.mulf %43, %3 : vector<4x256xf32>
    %c24 = arith.constant 24 : index
    %c0_39 = arith.constant 0 : index
    %45 = vector.load %arg7[%c24, %c0_39] : memref<72x512xf32, #tpu.memory_space<vmem>>, vector<4x256xf32>
    tpu.vector_store %arg7[%c24, %c0_39], %44 {strides = array<i32>} : memref<72x512xf32, #tpu.memory_space<vmem>>, vector<4x256xf32>,
    %c0_40 = arith.constant 0 : index
    %c0_41 = arith.constant 0 : index
    %c128_42 = arith.constant 128 : index
    %46 = vector.load %arg6[%c0_40, %c0_41, %c128_42] : memref<2x4x512xf32, #tpu.memory_space<vmem>>, vector<1x4x256xf32>
    %47 = vector.shape_cast %46 : vector<1x4x256xf32> to vector<4x256xf32>
    %c32 = arith.constant 32 : index
    %c0_43 = arith.constant 0 : index
    %48 = vector.load %arg7[%c32, %c0_43] : memref<72x512xf32, #tpu.memory_space<vmem>>, vector<4x256xf32>
    tpu.vector_store %arg7[%c32, %c0_43], %47 {strides = array<i32>} : memref<72x512xf32, #tpu.memory_space<vmem>>, vector<4x256xf32>,
    %c0_44 = arith.constant 0 : index
    %c0_45 = arith.constant 0 : index
    %c129 = arith.constant 129 : index
    %49 = vector.load %arg6[%c0_44, %c0_45, %c129] : memref<2x4x512xf32, #tpu.memory_space<vmem>>, vector<1x4x256xf32>
    %50 = vector.shape_cast %49 : vector<1x4x256xf32> to vector<4x256xf32>
    %51 = arith.mulf %50, %6 : vector<4x256xf32>
    %c40 = arith.constant 40 : index
    %c0_46 = arith.constant 0 : index
    %52 = vector.load %arg7[%c40, %c0_46] : memref<72x512xf32, #tpu.memory_space<vmem>>, vector<4x256xf32>
    tpu.vector_store %arg7[%c40, %c0_46], %51 {strides = array<i32>} : memref<72x512xf32, #tpu.memory_space<vmem>>, vector<4x256xf32>,
    %c0_47 = arith.constant 0 : index
    %c0_48 = arith.constant 0 : index
    %c143 = arith.constant 143 : index
    %53 = vector.load %arg6[%c0_47, %c0_48, %c143] : memref<2x4x512xf32, #tpu.memory_space<vmem>>, vector<1x4x256xf32>
    %54 = vector.shape_cast %53 : vector<1x4x256xf32> to vector<4x256xf32>
    %55 = arith.mulf %54, %3 : vector<4x256xf32>
    %c48 = arith.constant 48 : index
    %c0_49 = arith.constant 0 : index
    %56 = vector.load %arg7[%c48, %c0_49] : memref<72x512xf32, #tpu.memory_space<vmem>>, vector<4x256xf32>
    tpu.vector_store %arg7[%c48, %c0_49], %55 {strides = array<i32>} : memref<72x512xf32, #tpu.memory_space<vmem>>, vector<4x256xf32>,
    %c0_50 = arith.constant 0 : index
    %c0_51 = arith.constant 0 : index
    %c144 = arith.constant 144 : index
    %57 = vector.load %arg6[%c0_50, %c0_51, %c144] : memref<2x4x512xf32, #tpu.memory_space<vmem>>, vector<1x4x256xf32>
    %58 = vector.shape_cast %57 : vector<1x4x256xf32> to vector<4x256xf32>
    %c56 = arith.constant 56 : index
    %c0_52 = arith.constant 0 : index
    %59 = vector.load %arg7[%c56, %c0_52] : memref<72x512xf32, #tpu.memory_space<vmem>>, vector<4x256xf32>
    tpu.vector_store %arg7[%c56, %c0_52], %58 {strides = array<i32>} : memref<72x512xf32, #tpu.memory_space<vmem>>, vector<4x256xf32>,
    %c0_53 = arith.constant 0 : index
    %c0_54 = arith.constant 0 : index
    %c145 = arith.constant 145 : index
    %60 = vector.load %arg6[%c0_53, %c0_54, %c145] : memref<2x4x512xf32, #tpu.memory_space<vmem>>, vector<1x4x256xf32>
    %61 = vector.shape_cast %60 : vector<1x4x256xf32> to vector<4x256xf32>
    %62 = arith.mulf %61, %6 : vector<4x256xf32>
    %c64 = arith.constant 64 : index
    %c0_55 = arith.constant 0 : index
    %63 = vector.load %arg7[%c64, %c0_55] : memref<72x512xf32, #tpu.memory_space<vmem>>, vector<4x256xf32>
    tpu.vector_store %arg7[%c64, %c0_55], %62 {strides = array<i32>} : memref<72x512xf32, #tpu.memory_space<vmem>>, vector<4x256xf32>,
    %c1_56 = arith.constant 1 : index
    %c0_57 = arith.constant 0 : index
    %c111_58 = arith.constant 111 : index
    %64 = vector.load %arg6[%c1_56, %c0_57, %c111_58] : memref<2x4x512xf32, #tpu.memory_space<vmem>>, vector<1x4x256xf32>
    %65 = vector.shape_cast %64 : vector<1x4x256xf32> to vector<4x256xf32>
    %66 = arith.mulf %65, %3 : vector<4x256xf32>
    %c0_59 = arith.constant 0 : index
    %c256 = arith.constant 256 : index
    %67 = vector.load %arg7[%c0_59, %c256] : memref<72x512xf32, #tpu.memory_space<vmem>>, vector<4x256xf32>
    tpu.vector_store %arg7[%c0_59, %c256], %66 {strides = array<i32>} : memref<72x512xf32, #tpu.memory_space<vmem>>, vector<4x256xf32>,
    %c1_60 = arith.constant 1 : index
    %c0_61 = arith.constant 0 : index
    %c112_62 = arith.constant 112 : index
    %68 = vector.load %arg6[%c1_60, %c0_61, %c112_62] : memref<2x4x512xf32, #tpu.memory_space<vmem>>, vector<1x4x256xf32>
    %69 = vector.shape_cast %68 : vector<1x4x256xf32> to vector<4x256xf32>
    %c8_63 = arith.constant 8 : index
    %c256_64 = arith.constant 256 : index
    %70 = vector.load %arg7[%c8_63, %c256_64] : memref<72x512xf32, #tpu.memory_space<vmem>>, vector<4x256xf32>
    tpu.vector_store %arg7[%c8_63, %c256_64], %69 {strides = array<i32>} : memref<72x512xf32, #tpu.memory_space<vmem>>, vector<4x256xf32>,
    %c1_65 = arith.constant 1 : index
    %c0_66 = arith.constant 0 : index
    %c113_67 = arith.constant 113 : index
    %71 = vector.load %arg6[%c1_65, %c0_66, %c113_67] : memref<2x4x512xf32, #tpu.memory_space<vmem>>, vector<1x4x256xf32>
    %72 = vector.shape_cast %71 : vector<1x4x256xf32> to vector<4x256xf32>
    %73 = arith.mulf %72, %6 : vector<4x256xf32>
    %c16_68 = arith.constant 16 : index
    %c256_69 = arith.constant 256 : index
    %74 = vector.load %arg7[%c16_68, %c256_69] : memref<72x512xf32, #tpu.memory_space<vmem>>, vector<4x256xf32>
    tpu.vector_store %arg7[%c16_68, %c256_69], %73 {strides = array<i32>} : memref<72x512xf32, #tpu.memory_space<vmem>>, vector<4x256xf32>,
    %c1_70 = arith.constant 1 : index
    %c0_71 = arith.constant 0 : index
    %c127_72 = arith.constant 127 : index
    %75 = vector.load %arg6[%c1_70, %c0_71, %c127_72] : memref<2x4x512xf32, #tpu.memory_space<vmem>>, vector<1x4x256xf32>
    %76 = vector.shape_cast %75 : vector<1x4x256xf32> to vector<4x256xf32>
    %77 = arith.mulf %76, %3 : vector<4x256xf32>
    %c24_73 = arith.constant 24 : index
    %c256_74 = arith.constant 256 : index
    %78 = vector.load %arg7[%c24_73, %c256_74] : memref<72x512xf32, #tpu.memory_space<vmem>>, vector<4x256xf32>
    tpu.vector_store %arg7[%c24_73, %c256_74], %77 {strides = array<i32>} : memref<72x512xf32, #tpu.memory_space<vmem>>, vector<4x256xf32>,
    %c1_75 = arith.constant 1 : index
    %c0_76 = arith.constant 0 : index
    %c128_77 = arith.constant 128 : index
    %79 = vector.load %arg6[%c1_75, %c0_76, %c128_77] : memref<2x4x512xf32, #tpu.memory_space<vmem>>, vector<1x4x256xf32>
    %80 = vector.shape_cast %79 : vector<1x4x256xf32> to vector<4x256xf32>
    %c32_78 = arith.constant 32 : index
    %c256_79 = arith.constant 256 : index
    %81 = vector.load %arg7[%c32_78, %c256_79] : memref<72x512xf32, #tpu.memory_space<vmem>>, vector<4x256xf32>
    tpu.vector_store %arg7[%c32_78, %c256_79], %80 {strides = array<i32>} : memref<72x512xf32, #tpu.memory_space<vmem>>, vector<4x256xf32>,
    %c1_80 = arith.constant 1 : index
    %c0_81 = arith.constant 0 : index
    %c129_82 = arith.constant 129 : index
    %82 = vector.load %arg6[%c1_80, %c0_81, %c129_82] : memref<2x4x512xf32, #tpu.memory_space<vmem>>, vector<1x4x256xf32>
    %83 = vector.shape_cast %82 : vector<1x4x256xf32> to vector<4x256xf32>
    %84 = arith.mulf %83, %6 : vector<4x256xf32>
    %c40_83 = arith.constant 40 : index
    %c256_84 = arith.constant 256 : index
    %85 = vector.load %arg7[%c40_83, %c256_84] : memref<72x512xf32, #tpu.memory_space<vmem>>, vector<4x256xf32>
    tpu.vector_store %arg7[%c40_83, %c256_84], %84 {strides = array<i32>} : memref<72x512xf32, #tpu.memory_space<vmem>>, vector<4x256xf32>,
    %c1_85 = arith.constant 1 : index
    %c0_86 = arith.constant 0 : index
    %c143_87 = arith.constant 143 : index
    %86 = vector.load %arg6[%c1_85, %c0_86, %c143_87] : memref<2x4x512xf32, #tpu.memory_space<vmem>>, vector<1x4x256xf32>
    %87 = vector.shape_cast %86 : vector<1x4x256xf32> to vector<4x256xf32>
    %88 = arith.mulf %87, %3 : vector<4x256xf32>
    %c48_88 = arith.constant 48 : index
    %c256_89 = arith.constant 256 : index
    %89 = vector.load %arg7[%c48_88, %c256_89] : memref<72x512xf32, #tpu.memory_space<vmem>>, vector<4x256xf32>
    tpu.vector_store %arg7[%c48_88, %c256_89], %88 {strides = array<i32>} : memref<72x512xf32, #tpu.memory_space<vmem>>, vector<4x256xf32>,
    %c1_90 = arith.constant 1 : index
    %c0_91 = arith.constant 0 : index
    %c144_92 = arith.constant 144 : index
    %90 = vector.load %arg6[%c1_90, %c0_91, %c144_92] : memref<2x4x512xf32, #tpu.memory_space<vmem>>, vector<1x4x256xf32>
    %91 = vector.shape_cast %90 : vector<1x4x256xf32> to vector<4x256xf32>
    %c56_93 = arith.constant 56 : index
    %c256_94 = arith.constant 256 : index
    %92 = vector.load %arg7[%c56_93, %c256_94] : memref<72x512xf32, #tpu.memory_space<vmem>>, vector<4x256xf32>
    tpu.vector_store %arg7[%c56_93, %c256_94], %91 {strides = array<i32>} : memref<72x512xf32, #tpu.memory_space<vmem>>, vector<4x256xf32>,
    %c1_95 = arith.constant 1 : index
    %c0_96 = arith.constant 0 : index
    %c145_97 = arith.constant 145 : index
    %93 = vector.load %arg6[%c1_95, %c0_96, %c145_97] : memref<2x4x512xf32, #tpu.memory_space<vmem>>, vector<1x4x256xf32>
    %94 = vector.shape_cast %93 : vector<1x4x256xf32> to vector<4x256xf32>
    %95 = arith.mulf %94, %6 : vector<4x256xf32>
    %c64_98 = arith.constant 64 : index
    %c256_99 = arith.constant 256 : index
    %96 = vector.load %arg7[%c64_98, %c256_99] : memref<72x512xf32, #tpu.memory_space<vmem>>, vector<4x256xf32>
    tpu.vector_store %arg7[%c64_98, %c256_99], %95 {strides = array<i32>} : memref<72x512xf32, #tpu.memory_space<vmem>>, vector<4x256xf32>,
    %c0_100 = arith.constant 0 : index
    %c0_101 = arith.constant 0 : index
    %97 = vector.load %arg2[%c0_100, %c0_101] : memref<8x72xf32, #tpu.memory_space<vmem>>, vector<8x72xf32>
    %c0_102 = arith.constant 0 : index
    %c0_103 = arith.constant 0 : index
    %98 = vector.load %arg7[%c0_102, %c0_103] : memref<72x512xf32, #tpu.memory_space<vmem>>, vector<72x512xf32>
    %cst_104 = arith.constant dense<0.000000e+00> : vector<8x512xf32>
    %99 = tpu.matmul %97, %98, %cst_104 {dimension_numbers = #tpu.dot_dimension_numbers<[1], [0], [0], [1], [0, 0, 1, 1], [], []>} : vector<8x72xf32>, vector<72x512xf32>, vector<8x512xf32> -> vector<8x512xf32>
    %c0_105 = arith.constant 0 : index
    %c0_106 = arith.constant 0 : index
    %100 = vector.load %arg3[%c0_105, %c0_106] : memref<8x1xf32, #tpu.memory_space<vmem>>, vector<8x1xf32>
    %101 = vector.broadcast %100 : vector<8x1xf32> to vector<8x512xf32>
    %102 = arith.addf %99, %101 : vector<8x512xf32>
    %103 = vector.extract_strided_slice %102 {offsets = [0, 0], sizes = [8, 256], strides = [1, 1]} : vector<8x512xf32> to vector<8x256xf32>
    %c0_107 = arith.constant 0 : index
    %c0_108 = arith.constant 0 : index
    %c0_109 = arith.constant 0 : index
    %104 = vector.load %arg5[%c0_107, %c0_108, %c0_109] : memref<2x8x256xf32, #tpu.memory_space<vmem>>, vector<1x8x256xf32>
    %105 = vector.shape_cast %104 : vector<1x8x256xf32> to vector<8x256xf32>
    %106 = vector.shape_cast %103 : vector<8x256xf32> to vector<1x8x256xf32>
    tpu.vector_store %arg5[%c0_107, %c0_108, %c0_109], %106 {strides = array<i32>} : memref<2x8x256xf32, #tpu.memory_space<vmem>>, vector<1x8x256xf32>,
    %107 = vector.extract_strided_slice %102 {offsets = [0, 256], sizes = [8, 256], strides = [1, 1]} : vector<8x512xf32> to vector<8x256xf32>
    %c1_110 = arith.constant 1 : index
    %c0_111 = arith.constant 0 : index
    %c0_112 = arith.constant 0 : index
    %108 = vector.load %arg5[%c1_110, %c0_111, %c0_112] : memref<2x8x256xf32, #tpu.memory_space<vmem>>, vector<1x8x256xf32>
    %109 = vector.shape_cast %108 : vector<1x8x256xf32> to vector<8x256xf32>
    %110 = vector.shape_cast %107 : vector<8x256xf32> to vector<1x8x256xf32>
    tpu.vector_store %arg5[%c1_110, %c0_111, %c0_112], %110 {strides = array<i32>} : memref<2x8x256xf32, #tpu.memory_space<vmem>>, vector<1x8x256xf32>,
    return
  }
  func.func @transform_0(%arg0: i32) -> (i32, i32, i32) {
    %c0_i32 = arith.constant 0 : i32
    %c0_i32_0 = arith.constant 0 : i32
    %c0_i32_1 = arith.constant 0 : i32
    return %arg0, %c0_i32, %c0_i32_0 : i32, i32, i32
  }
  func.func @transform_1(%arg0: i32) -> (i32, i32) {
    %c0_i32 = arith.constant 0 : i32
    %c0_i32_0 = arith.constant 0 : i32
    %c0_i32_1 = arith.constant 0 : i32
    return %c0_i32, %c0_i32_0 : i32, i32
  }
  func.func @transform_2(%arg0: i32) -> (i32, i32) {
    %c0_i32 = arith.constant 0 : i32
    %c0_i32_0 = arith.constant 0 : i32
    %c0_i32_1 = arith.constant 0 : i32
    return %c0_i32, %c0_i32_0 : i32, i32
  }
  func.func @transform_3(%arg0: i32) -> (i32, i32) {
    %c0_i32 = arith.constant 0 : i32
    %c0_i32_0 = arith.constant 0 : i32
    %c0_i32_1 = arith.constant 0 : i32
    return %c0_i32, %c0_i32_0 : i32, i32
  }
  func.func @transform_4(%arg0: i32) -> (i32, i32, i32) {
    %c0_i32 = arith.constant 0 : i32
    %c0_i32_0 = arith.constant 0 : i32
    %c0_i32_1 = arith.constant 0 : i32
    return %arg0, %c0_i32, %c0_i32_0 : i32, i32, i32
  }
}

</mosaic_0001>

<bundles_post_ra>
// kernel: tpu_custom_call.1
= control target key start
LH: loop header
LB: loop body
LE: loop exit
PB: predicated region body
PF: predicated region fallthrough
CT: control target
= control target key end

     0   :  { %9 = vsyncpa [#allocation5], 0  ;;  %s974_s0 = inlined_call_operand.hbm [shape: f32[2,4,256], index: 0, kind: input, shape index: {}]   ;;  %s975_s1 = inlined_call_operand.vmem [shape: f32[8,72], index: 1, kind: input, shape index: {}]   ;;  %s976_s2 = inlined_call_operand.vmem [shape: f32[8,1], index: 2, kind: input, shape index: {}]   ;;  %s977_s3 = inlined_call_operand.vmem [shape: f32[2,256], index: 3, kind: input, shape index: {}]   ;;  %s978_s4 = inlined_call_operand.hbm [shape: f32[2,8,256], index: 4, kind: output, shape index: {}]  }
   0x1   :  { %10 = vsyncpa [#allocation6], 0  ;;  %s731_s15 = smov [#allocation4]  }
   0x2   :  { %s16_s16 = sshll.u32 %s731_s15, 4  ;;  %s17_s16 = int_to_ptr.vmem [resolvable:$true] %s16_s16 }
   0x3   :  { %s695_s17 = scalar_lea.vmem %s17_s16, 256  ;;  %p700_p1 = scmp.lt.s32.totalorder %s17_s16, %s17_s16 }
   0x4   :  { %p696_p0 = scmp.ne.s32.totalorder %s17_s16, %s695_s17  ;;  %p701_p2 = scmp.lt.s32.totalorder %s695_s17, %s695_s17 }
   0x6   :  { %p702_p3 = por %p701_p2, %p700_p1 }
   0x8   :  { %p703_p4 = pnand %p702_p3, %p696_p0 }
   0xa   :  { %706 = shalt.err (!%p703_p4)
}
   0xb   :  { %s732_s18 = smov 128   ;;  %s733_s19 = smov 8  }
   0xc   :  { %22 = dma.hbm_to_vmem [thread:$0]  %s974_s0, 256, %s17_s16, [#allocation5], %s732_s18, %s732_s18, %s733_s19  }
   0xd   :  { %727 = dma.done.wait [#allocation5], 256  }
   0xe   :  { %728 = vsyncadd [#allocation5], 4294967040  ;;  %v34_v0 = vlaneseq  ;;  %v734_v1 = vmov 0.0   ;;  %v664_v5 = vld [vmem:[%s977_s3 + $0x1] ss:$2 sm:$0x3] }
   0xf   :  { %54 = vst [vmem:[#allocation2 + $0xc] sm:$0xf] %v734_v1  ;;  %53 = vst [vmem:[#allocation2] sm:$0xf] %v734_v1  ;;  %635 = vmatprep.mubr.f32.mxu1 %v734_v1  ;;  %564 = vmatprep.mubr.f32.mxu0 %v734_v1  ;;  %v780_v12 = vld [vmem:[#allocation4] sm:$0xff]  ;;  %v782_v13 = vld [vmem:[#allocation4 + $0x8] sm:$0xff] }
  0x10   :  { %58 = vst [vmem:[#allocation2 + $0x10] sm:$0xf] %v734_v1  ;;  %59 = vst [vmem:[#allocation2 + $0x1c] sm:$0xf] %v734_v1  ;;  %v35_v2 = vshrl.u32 %v34_v0, 7  ;;  %s735_s25 = smov 112   ;;  %v260_v14 = vcombine.high %v780_v12, %v780_v12  ;;  %v421_v15 = vcombine.high %v782_v13, %v782_v13 }
  0x11   :  { %63 = vst [vmem:[#allocation3 + $0xb0] sm:$0xff] %v734_v1  ;;  %64 = vst [vmem:[#allocation3 + $0xd0] sm:$0xff] %v734_v1  ;;  %v32_v6 = vld [vmem:[%s977_s3] ss:$2 sm:$0x3]  ;;  %s736_s3 = smov 17  }
  0x12   :  { %65 = vst [vmem:[#allocation3 + $0x10] sm:$0xff] %v734_v1  ;;  %66 = vst [vmem:[#allocation3 + $0x48] sm:$0xff] %v734_v1  ;;  %v36_v3 = vsub.s32 0, %v35_v2  ;;  %v40_v4 = vsub.s32 1, %v35_v2  ;;  %s737_s26 = smov 1   ;;  %s738_s27 = smov 15  }
  0x13   :  { %67 = vst [vmem:[#allocation3 + $0x108] sm:$0xff] %v734_v1  ;;  %68 = vst [vmem:[#allocation3 + $0x68] sm:$0xff] %v734_v1  ;;  %s739_s28 = smov 127   ;;  %s740_s29 = smov 113   ;;  %vm120_vm0 = vcmask 138240   ;;  %vm166_vm1 = vcmask 121856  }
  0x14   :  { %69 = vst [vmem:[#allocation3 + $0x30] sm:$0xff] %v734_v1  ;;  %70 = vst [vmem:[#allocation3 + $0x18] sm:$0xff] %v734_v1  ;;  %v48_v7 = vrot.slane %v664_v5, %v36_v3  ;;  %v52_v8 = vrot.slane %v664_v5, %v40_v4  ;;  %v37_v10 = vrot.slane %v32_v6, %v36_v3  ;;  %s741_s30 = smov 111   ;;  %s742_s5 = smov 16   ;;  %vm193_vm2 = vcmask 7168  }
  0x15   :  { %71 = vst [vmem:[#allocation3 + $0x80] sm:$0xff] %v734_v1  ;;  %72 = vst [vmem:[#allocation3 + $0x110] sm:$0xff] %v734_v1  ;;  %v41_v11 = vrot.slane %v32_v6, %v40_v4  ;;  %vm178_vm3 = vcmask 1039360   ;;  %vm267_vm4 = vcmask 916480   ;;  %vm151_vm5 = vcmask 924672   ;;  %s744_s9 = smov [#allocation7]  }
  0x16   :  { %73 = vst [vmem:[#allocation3 + $0x118] sm:$0xff] %v734_v1  ;;  %74 = vst [vmem:[#allocation3 + $0x98] sm:$0xff] %v734_v1  ;;  %v257_v9 = vld [vmem:[#allocation2 + $0xc] sm:$0xf]  ;;  %v147_v16 = vcombine.low %v48_v7, %v52_v8  ;;  %vm138_vm6 = vcmask 130048   ;;  %vm105_vm7 = vcmask 908288  }
  0x17   :  { %75 = vst [vmem:[#allocation3 + $0xf8] sm:$0xff] %v734_v1  ;;  %76 = vst [vmem:[#allocation3 + $0x38] sm:$0xff] %v734_v1  ;;  %265 = vrot.lane.b32.xlu1 %v257_v9, %s735_s25  ;;  %v101_v17 = vcombine.low %v37_v10, %v41_v11  ;;  %v418_v18 = vld [vmem:[#allocation2 + $0x1c] sm:$0xf]  ;;  %v275_v27 = vld [vmem:[#allocation2 + $0xc] sm:$0xf] }
  0x18   :  { %77 = vst [vmem:[#allocation3 + $0x8] sm:$0xff] %v734_v1  ;;  %78 = vst [vmem:[#allocation3 + $0x78] sm:$0xff] %v734_v1  ;;  %276 = vrot.lane.b32.xlu0 %v147_v16, %s736_s3  ;;  %v435_v34 = vld [vmem:[#allocation2 + $0x1c] sm:$0xf]  ;;  %v232_v42 = vld [vmem:[#allocation2 + $0xc] sm:$0xf] }
  0x19   :  { %79 = vst [vmem:[#allocation3 + $0x20] sm:$0xff] %v734_v1  ;;  %80 = vst [vmem:[#allocation3 + $0xc8] sm:$0xff] %v734_v1  ;;  %v399_v49 = vld [vmem:[#allocation2 + $0x1c] sm:$0xf]  ;;  %v207_v56 = vld [vmem:[#allocation2 + $0xc] sm:$0xf] }
  0x1a   :  { %81 = vst [vmem:[#allocation3 + $0x90] sm:$0xff] %v734_v1  ;;  %82 = vst [vmem:[#allocation3 + $0xa0] sm:$0xff] %v734_v1  ;;  %v380_v0 = vld [vmem:[#allocation2 + $0x1c] sm:$0xf]  ;;  %vm496_vm8 = vcmask 588800   ;;  %s652_s10 = sshll.u32 %s744_s9, 4  ;;  %s653_s10 = int_to_ptr.vmem [resolvable:$true] %s652_s10 }
  0x1b   :  { %83 = vst [vmem:[#allocation3 + $0x70] sm:$0xff] %v734_v1  ;;  %84 = vst [vmem:[#allocation3 + $0x58] sm:$0xff] %v734_v1  ;;  %208 = vrot.lane.b32.xlu1 %v147_v16, %s737_s26  ;;  %p712_p6 = scmp.lt.s32.totalorder %s653_s10, %s653_s10 }
  0x1c   :  { %85 = vst [vmem:[#allocation3 + $0xe0] sm:$0xff] %v734_v1  ;;  %86 = vst [vmem:[#allocation3 + $0x60] sm:$0xff] %v734_v1  ;;  %233 = vrot.lane.b32.xlu0 %v101_v17, %s738_s27 }
  0x1d   :  { %87 = vst [vmem:[#allocation3 + $0xa8] sm:$0xff] %v734_v1  ;;  %88 = vst [vmem:[#allocation3 + $0x88] sm:$0xff] %v734_v1 }
  0x1e   :  { %89 = vst [vmem:[#allocation3 + $0xd8] sm:$0xff] %v734_v1  ;;  %90 = vst [vmem:[#allocation3 + $0xc0] sm:$0xff] %v734_v1 }
  0x1f   :  { %91 = vst [vmem:[#allocation3 + $0x50] sm:$0xff] %v734_v1  ;;  %92 = vst [vmem:[#allocation3 + $0xf0] sm:$0xff] %v734_v1  ;;  %175 = vrot.lane.b32.xlu1 %v101_v17, %s739_s28 }
  0x20   :  { %93 = vst [vmem:[#allocation3 + $0xb8] sm:$0xff] %v734_v1  ;;  %94 = vst [vmem:[#allocation3 + $0x28] sm:$0xff] %v734_v1  ;;  %148 = vrot.lane.b32.xlu0 %v147_v16, %s740_s29 }
  0x21   :  { %95 = vst [vmem:[#allocation3 + $0x100] sm:$0xff] %v734_v1  ;;  %96 = vst [vmem:[#allocation3] sm:$0xff] %v734_v1 }
  0x22   :  { %97 = vst [vmem:[#allocation3 + $0x40] sm:$0xff] %v734_v1  ;;  %98 = vst [vmem:[#allocation3 + $0xe8] sm:$0xff] %v734_v1 }
  0x23   :  { %56 = vst [vmem:[#allocation2 + $0x4] sm:$0xff] %v780_v12  ;;  %62 = vst [vmem:[#allocation2 + $0x14] sm:$0xff] %v782_v13  ;;  %102 = vrot.lane.b32.xlu1 %v101_v17, %s741_s30 }
  0x24   :  { %204 = vst [vmem:[#allocation3 + $0x20] sm:$0xf] %v780_v12  ;;  %377 = vst [vmem:[#allocation3 + $0x90] sm:$0xf] %v782_v13  ;;  %263 = vrot.lane.b32.xlu0 %v260_v14, %s735_s25 }
  0x25   :  { %205 = vst [vmem:[#allocation3 + $0xc8] sm:$0xf] %v260_v14  ;;  %378 = vst [vmem:[#allocation3 + $0xa0] sm:$0xf] %v421_v15 }
  0x27   :  { %426 = vrot.lane.b32.xlu1 %v418_v18, %s735_s25 }
  0x28   :  { %424 = vrot.lane.b32.xlu0 %v421_v15, %s735_s25 }
  0x2a   :  { %v804_v19 = vld [vmem:[#allocation2] sm:$0xff]  ;;  %v128_v20 = vld [vmem:[#allocation2 + $0x8] sm:$0xf]  ;;  %v811_v22 = vld [vmem:[#allocation2 + $0x10] sm:$0xff] }
  0x2b   :  { %422 = vrot.lane.b32.xlu1 %v782_v13, %s735_s25  ;;  %v131_v21 = vcombine.high %v804_v19, %v804_v19  ;;  %v319_v23 = vld [vmem:[#allocation2 + $0x18] sm:$0xf]  ;;  %v322_v24 = vcombine.high %v811_v22, %v811_v22  ;;  %v174_v7 = vld [vmem:[#allocation2 + $0x8] sm:$0xf] }
  0x2c   :  { %261 = vrot.lane.b32.xlu0 %v780_v12, %s735_s25  ;;  %v355_v14 = vld [vmem:[#allocation2 + $0x18] sm:$0xf] }
  0x2f   :  { %136 = vrot.lane.b32.xlu1 %v128_v20, %s742_s5 }
  0x30   :  { %134 = vrot.lane.b32.xlu0 %v131_v21, %s742_s5 }
  0x33   :  { %327 = vrot.lane.b32.xlu1 %v319_v23, %s742_s5 }
  0x34   :  { %325 = vrot.lane.b32.xlu0 %v322_v24, %s742_s5  ;;  %v146_v24 = vld [vmem:[#allocation2 + $0x8] sm:$0xf] }
  0x37   :  { %323 = vrot.lane.b32.xlu1 %v811_v22, %s742_s5 }
  0x38   :  { %132 = vrot.lane.b32.xlu0 %v804_v19, %s742_s5 }
  0x89   :  { %v266_v25 = vpop.permute.xlu1 %265 }
  0x8a   :  { %v277_v26 = vpop.permute.xlu0 %276 }
  0x8b   :  { %v278_v28 = vrot.slane %v277_v26, 4 }
  0x8d   :  { %v209_v29 = vpop.permute.xlu1 %208  ;;  %v279_v30 = vsel %vm120_vm0, %v278_v28, %v277_v26  ;;  %v283_v31 = vmul.f32 %v278_v28, %v275_v27  ;;  %v437_v39 = vmul.f32 %v435_v34, %v278_v28 }
  0x8e   :  { %v824_v32 = vmul.f32 %v279_v30, %v780_v12  ;;  %v234_v33 = vpop.permute.xlu0 %233  ;;  %v210_v36 = vrot.slane %v209_v29, 4  ;;  %v436_v5 = vmul.f32 %v279_v30, %v782_v13 }
  0x8f   :  { %v235_v35 = vrot.slane %v234_v33, 4  ;;  %291 = vrot.lane.b32.xlu1 %v283_v31, %s741_s30  ;;  %v100_v31 = vld [vmem:[#allocation2 + $0x8] sm:$0xf] }
  0x90   :  { %287 = vrot.lane.b32.xlu0 %v824_v32, %s741_s30  ;;  %v837_v43 = vsel %vm193_vm2, %v210_v36, %v209_v29  ;;  %v215_v62 = vmul.f32 %v210_v36, %v207_v56  ;;  %v382_v4 = vmul.f32 %v380_v0, %v210_v36  ;;  %v286_v6 = vcombine.high %v824_v32, %v824_v32  ;;  %v336_v29 = vld [vmem:[#allocation2 + $0x18] sm:$0xf] }
  0x91   :  { %v176_v37 = vpop.permute.xlu1 %175  ;;  %v830_v38 = vsel %vm166_vm1, %v235_v35, %v234_v33  ;;  %v240_v46 = vmul.f32 %v235_v35, %v232_v42  ;;  %v846_v47 = vmul.f32 %v837_v43, %v780_v12  ;;  %v401_v54 = vmul.f32 %v399_v49, %v235_v35 }
  0x92   :  { %v834_v40 = vmul.f32 %v830_v38, %v780_v12  ;;  %v149_v41 = vpop.permute.xlu0 %148  ;;  %v177_v44 = vrot.slane %v176_v37, 4  ;;  %v440_v12 = vcombine.high %v436_v5, %v436_v5  ;;  %v400_v21 = vmul.f32 %v830_v38, %v782_v13 }
  0x93   :  { %445 = vrot.lane.b32.xlu1 %v437_v39, %s741_s30  ;;  %v848_v50 = vrot.slane %v149_v41, 4  ;;  %v381_v33 = vmul.f32 %v837_v43, %v782_v13  ;;  %v218_v34 = vcombine.high %v846_v47, %v846_v47 }
  0x94   :  { %244 = vrot.lane.b32.xlu0 %v834_v40, %s740_s29  ;;  %v851_v51 = vsel %vm178_vm3, %v177_v44, %v176_v37  ;;  %v183_v11 = vmul.f32 %v177_v44, %v174_v7  ;;  %v357_v20 = vmul.f32 %v355_v14, %v177_v44  ;;  %v243_v23 = vcombine.high %v834_v40, %v834_v40  ;;  %v300_v37 = vld [vmem:[#allocation2 + $0x18] sm:$0xf] }
  0x95   :  { %v840_v45 = vpop.permute.xlu1 %102  ;;  %v859_v55 = vmul.f32 %v851_v51, %v804_v19  ;;  %v863_v58 = vsel %vm151_vm5, %v848_v50, %v149_v41  ;;  %v156_v27 = vmul.f32 %v848_v50, %v146_v24  ;;  %v404_v28 = vcombine.high %v400_v21, %v400_v21 }
  0x96   :  { %v264_v48 = vpop.permute.xlu0 %263  ;;  %v872_v63 = vmul.f32 %v863_v58, %v804_v19  ;;  %v104_v30 = vrot.slane %v840_v45, 4  ;;  %v338_v32 = vmul.f32 %v336_v29, %v848_v50  ;;  %v385_v36 = vcombine.high %v381_v33, %v381_v33 }
  0x97   :  { %v269_v52 = vsel %vm267_vm4, %v264_v48, %v266_v25  ;;  %248 = vrot.lane.b32.xlu1 %v240_v46, %s740_s29  ;;  %v356_v39 = vmul.f32 %v811_v22, %v851_v51  ;;  %v186_v13 = vcombine.high %v859_v55, %v859_v55  ;;  %v337_v41 = vmul.f32 %v811_v22, %v863_v58 }
  0x98   :  { %273 = vst [vmem:[#allocation3 + $0xf0] sm:$0xf] %v269_v52  ;;  %219 = vrot.lane.b32.xlu0 %v846_v47, %s739_s28  ;;  %v110_v35 = vmul.f32 %v104_v30, %v100_v31  ;;  %v302_v38 = vmul.f32 %v300_v37, %v104_v30  ;;  %v159_v42 = vcombine.high %v872_v63, %v872_v63 }
  0x99   :  { %v427_v53 = vpop.permute.xlu1 %426  ;;  %v360_v40 = vcombine.high %v356_v39, %v356_v39  ;;  %v106_v43 = vsel %vm105_vm7, %v104_v30, %v840_v45  ;;  %v341_v46 = vcombine.high %v337_v41, %v337_v41  ;;  %v743_v45 = vmov 0  }
  0x9a   :  { %v425_v57 = vpop.permute.xlu0 %424  ;;  %v109_v44 = vmul.f32 %v804_v19, %v106_v43  ;;  %v301_v47 = vmul.f32 %v811_v22, %v106_v43  ;;  %682 = vset.pattern.permute.xlu0 %v743_v45  ;;  %v490_v19 = vld [vmem:[%s976_s2] sm:$0xff] }
  0x9b   :  { %409 = vrot.lane.b32.xlu1 %v401_v54, %s740_s29  ;;  %v429_v59 = vsel %vm267_vm4, %v425_v57, %v427_v53 }
  0x9c   :  { %187 = vrot.lane.b32.xlu0 %v859_v55, %s737_s26  ;;  %433 = vst [vmem:[#allocation3 + $0x28] sm:$0xf] %v429_v59  ;;  %v305_v49 = vcombine.high %v301_v47, %v301_v47 }
  0x9d   :  { %v423_v60 = vpop.permute.xlu1 %422 }
  0x9e   :  { %v428_v61 = vsel %vm267_vm4, %v423_v60, %v425_v57  ;;  %v262_v1 = vpop.permute.xlu0 %261 }
  0x9f   :  { %432 = vst [vmem:[#allocation3 + $0xb8] sm:$0xf] %v428_v61  ;;  %223 = vrot.lane.b32.xlu1 %v215_v62, %s739_s28  ;;  %v268_v2 = vsel %vm267_vm4, %v262_v1, %v264_v48  ;;  %v113_v48 = vcombine.high %v109_v44, %v109_v44 }
  0xa0   :  { %160 = vrot.lane.b32.xlu0 %v872_v63, %s738_s27  ;;  %272 = vst [vmem:[#allocation3 + $0x50] sm:$0xf] %v268_v2 }
  0xa1   :  { %v137_v3 = vpop.permute.xlu1 %136 }
  0xa2   :  { %v135_v8 = vpop.permute.xlu0 %134 }
  0xa3   :  { %390 = vrot.lane.b32.xlu1 %v382_v4, %s739_s28  ;;  %v140_v9 = vsel %vm138_vm6, %v135_v8, %v137_v3  ;;  %v485_v45 = vld [vmem:[#allocation3 + $0x28] sm:$0xff] }
  0xa4   :  { %289 = vrot.lane.b32.xlu0 %v286_v6, %s741_s30  ;;  %144 = vst [vmem:[#allocation3 + $0x68] sm:$0xf] %v140_v9  ;;  %v483_v9 = vld [vmem:[#allocation3 + $0xf0] sm:$0xff] }
  0xa5   :  { %v328_v10 = vpop.permute.xlu1 %327 }
  0xa6   :  { %v326_v15 = vpop.permute.xlu0 %325 }
  0xa7   :  { %191 = vrot.lane.b32.xlu1 %v183_v11, %s737_s26  ;;  %v330_v16 = vsel %vm138_vm6, %v326_v15, %v328_v10  ;;  %v482_v11 = vld [vmem:[#allocation3 + $0x50] sm:$0xff] }
  0xa8   :  { %443 = vrot.lane.b32.xlu0 %v440_v12, %s741_s30  ;;  %334 = vst [vmem:[#allocation3 + $0x18] sm:$0xf] %v330_v16 }
  0xa9   :  { %v324_v17 = vpop.permute.xlu1 %323 }
  0xaa   :  { %v329_v18 = vsel %vm138_vm6, %v324_v17, %v326_v15  ;;  %v133_v25 = vpop.permute.xlu0 %132 }
  0xab   :  { %333 = vst [vmem:[#allocation3 + $0x30] sm:$0xf] %v329_v18  ;;  %365 = vrot.lane.b32.xlu1 %v357_v20, %s737_s26  ;;  %v139_v26 = vsel %vm138_vm6, %v133_v25, %v135_v8 }
  0xac   :  { %246 = vrot.lane.b32.xlu0 %v243_v23, %s740_s29  ;;  %143 = vst [vmem:[#allocation3 + $0x108] sm:$0xf] %v139_v26 }
  0xaf   :  { %164 = vrot.lane.b32.xlu1 %v156_v27, %s738_s27 }
  0xb0   :  { %407 = vrot.lane.b32.xlu0 %v404_v28, %s740_s29 }
  0xb3   :  { %346 = vrot.lane.b32.xlu1 %v338_v32, %s738_s27  ;;  %v471_v32 = vld [vmem:[#allocation3 + $0xc8] sm:$0xff] }
  0xb4   :  { %221 = vrot.lane.b32.xlu0 %v218_v34, %s739_s28 }
  0xb7   :  { %118 = vrot.lane.b32.xlu1 %v110_v35, %s736_s3 }
  0xb8   :  { %388 = vrot.lane.b32.xlu0 %v385_v36, %s739_s28 }
  0xbb   :  { %310 = vrot.lane.b32.xlu1 %v302_v38, %s736_s3 }
  0xbc   :  { %189 = vrot.lane.b32.xlu0 %v186_v13, %s737_s26 }
  0xbf   :  { %441 = vrot.lane.b32.xlu1 %v436_v5, %s741_s30 }
  0xc0   :  { %363 = vrot.lane.b32.xlu0 %v360_v40, %s737_s26 }
  0xc3   :  { %405 = vrot.lane.b32.xlu1 %v400_v21, %s740_s29 }
  0xc4   :  { %162 = vrot.lane.b32.xlu0 %v159_v42, %s738_s27 }
  0xc7   :  { %386 = vrot.lane.b32.xlu1 %v381_v33, %s739_s28  ;;  %v470_v33 = vld [vmem:[#allocation3 + $0x20] sm:$0xff] }
  0xc8   :  { %344 = vrot.lane.b32.xlu0 %v341_v46, %s738_s27 }
  0xcb   :  { %361 = vrot.lane.b32.xlu1 %v356_v39, %s737_s26 }
  0xcc   :  { %116 = vrot.lane.b32.xlu0 %v113_v48, %s736_s3 }
  0xcf   :  { %342 = vrot.lane.b32.xlu1 %v337_v41, %s738_s27 }
  0xd0   :  { %308 = vrot.lane.b32.xlu0 %v305_v49, %s736_s3 }
  0xd3   :  { %306 = vrot.lane.b32.xlu1 %v301_v47, %s736_s3 }
  0xd4   :  { %114 = vrot.lane.b32.xlu0 %v109_v44, %s736_s3 }
  0xd8   :  { %493 = vperm.xlu0 %682, %v490_v19   ;;  %v484_v19 = vld [vmem:[#allocation3 + $0xb8] sm:$0xff] }
 0x101   :  { %v292_v22 = vpop.permute.xlu1 %291 }
 0x102   :  { %v288_v50 = vpop.permute.xlu0 %287 }
 0x105   :  { %v446_v51 = vpop.permute.xlu1 %445 }
 0x106   :  { %v245_v52 = vpop.permute.xlu0 %244 }
 0x109   :  { %v249_v53 = vpop.permute.xlu1 %248 }
 0x10a   :  { %v220_v54 = vpop.permute.xlu0 %219 }
 0x10d   :  { %v410_v55 = vpop.permute.xlu1 %409 }
 0x10e   :  { %v188_v56 = vpop.permute.xlu0 %187 }
 0x111   :  { %v224_v57 = vpop.permute.xlu1 %223 }
 0x112   :  { %v937_v58 = vpop.permute.xlu0 %160 }
 0x115   :  { %v391_v59 = vpop.permute.xlu1 %390 }
 0x116   :  { %v290_v60 = vpop.permute.xlu0 %289 }
 0x117   :  { %v293_v61 = vsel %vm105_vm7, %v288_v50, %v290_v60  ;;  %v294_v62 = vsel %vm105_vm7, %v290_v60, %v292_v22  ;;  %v473_v60 = vld [vmem:[#allocation3 + $0xa0] sm:$0xff] }
 0x118   :  { %297 = vst [vmem:[#allocation3 + $0x100] sm:$0xf] %v293_v61  ;;  %298 = vst [vmem:[#allocation3] sm:$0xf] %v294_v62 }
 0x119   :  { %v192_v63 = vpop.permute.xlu1 %191 }
 0x11a   :  { %v444_v0 = vpop.permute.xlu0 %443 }
 0x11b   :  { %v448_v1 = vsel %vm105_vm7, %v444_v0, %v446_v51 }
 0x11c   :  { %452 = vst [vmem:[#allocation3 + $0xe8] sm:$0xf] %v448_v1  ;;  %v472_v1 = vld [vmem:[#allocation3 + $0x90] sm:$0xff] }
 0x11d   :  { %v366_v2 = vpop.permute.xlu1 %365 }
 0x11e   :  { %v247_v3 = vpop.permute.xlu0 %246 }
 0x11f   :  { %v250_v4 = vsel %vm151_vm5, %v245_v52, %v247_v3  ;;  %v251_v5 = vsel %vm151_vm5, %v247_v3, %v249_v53  ;;  %v487_v6 = vld [vmem:[#allocation3] sm:$0xff] }
 0x120   :  { %v486_v7 = vld [vmem:[#allocation3 + $0x100] sm:$0xff]  ;;  %254 = vst [vmem:[#allocation3 + $0xa8] sm:$0xf] %v250_v4  ;;  %255 = vst [vmem:[#allocation3 + $0x88] sm:$0xf] %v251_v5  ;;  %514 = vmatprep.subr.mxu0 %v487_v6 }
 0x121   :  { %v165_v8 = vpop.permute.xlu1 %164  ;;  %515 = vmatpush1.msra.mxu0 %v486_v7 }
 0x122   :  { %516 = vmatprep.subr.mxu0 %v483_v9  ;;  %v408_v10 = vpop.permute.xlu0 %407 }
 0x123   :  { %v412_v12 = vsel %vm151_vm5, %v408_v10, %v410_v55  ;;  %517 = vmatpush1.msra.mxu0 %v482_v11  ;;  %v489_v14 = vld [vmem:[#allocation3 + $0xe8] sm:$0xff] }
 0x124   :  { %416 = vst [vmem:[#allocation3 + $0xc0] sm:$0xf] %v412_v12  ;;  %585 = vmatprep.subr.mxu1 %v489_v14  ;;  %v461_v12 = vld [vmem:[#allocation3 + $0x18] sm:$0xff]  ;;  %v460_v14 = vld [vmem:[#allocation3 + $0x30] sm:$0xff] }
 0x125   :  { %v347_v15 = vpop.permute.xlu1 %346 }
 0x126   :  { %v222_v16 = vpop.permute.xlu0 %221 }
 0x127   :  { %v225_v17 = vsel %vm178_vm3, %v220_v54, %v222_v16  ;;  %v226_v18 = vsel %vm178_vm3, %v222_v16, %v224_v57  ;;  %v479_v20 = vld [vmem:[#allocation3 + $0x88] sm:$0xff]  ;;  %v453_v16 = vld [vmem:[%s975_s1] sm:$0xff]  ;;  %s707_s1 = scalar_lea.vmem %s653_s10, 512 }
 0x128   :  { %v478_v21 = vld [vmem:[#allocation3 + $0xa8] sm:$0xff]  ;;  %229 = vst [vmem:[#allocation3 + $0x70] sm:$0xf] %v225_v17  ;;  %230 = vst [vmem:[#allocation3 + $0x58] sm:$0xf] %v226_v18  ;;  %518 = vmatprep.subr.mxu0 %v479_v20  ;;  %p708_p5 = scmp.ne.s32.totalorder %s653_s10, %s707_s1  ;;  %p713_p7 = scmp.lt.s32.totalorder %s707_s1, %s707_s1 }
 0x129   :  { %v119_v23 = vpop.permute.xlu1 %118  ;;  %519 = vmatpush1.msra.mxu0 %v478_v21 }
 0x12a   :  { %v389_v24 = vpop.permute.xlu0 %388  ;;  %p714_p8 = por %p713_p7, %p712_p6 }
 0x12b   :  { %v393_v25 = vsel %vm178_vm3, %v389_v24, %v391_v59  ;;  %v481_v50 = vld [vmem:[#allocation3 + $0xc0] sm:$0xff]  ;;  %v459_v59 = vld [vmem:[#allocation3 + $0x68] sm:$0xff] }
 0x12c   :  { %397 = vst [vmem:[#allocation3 + $0x60] sm:$0xf] %v393_v25  ;;  %p715_p9 = pnand %p714_p8, %p708_p5 }
 0x12d   :  { %v948_v26 = vpop.permute.xlu1 %310 }
 0x12e   :  { %v190_v27 = vpop.permute.xlu0 %189 }
 0x12f   :  { %v194_v28 = vsel %vm193_vm2, %v188_v56, %v190_v27  ;;  %v195_v29 = vsel %vm193_vm2, %v190_v27, %v192_v63  ;;  %v475_v30 = vld [vmem:[#allocation3 + $0x58] sm:$0xff]  ;;  %v474_v31 = vld [vmem:[#allocation3 + $0x70] sm:$0xff]  ;;  %v458_v63 = vld [vmem:[#allocation3 + $0x108] sm:$0xff] }
 0x130   :  { %198 = vst [vmem:[#allocation3 + $0xf8] sm:$0xf] %v194_v28  ;;  %199 = vst [vmem:[#allocation3 + $0x38] sm:$0xf] %v195_v29  ;;  %520 = vmatprep.subr.mxu0 %v475_v30 }
 0x131   :  { %v442_v34 = vpop.permute.xlu1 %441  ;;  %521 = vmatpush1.msra.mxu0 %v474_v31 }
 0x132   :  { %v447_v35 = vsel %vm105_vm7, %v442_v34, %v444_v0  ;;  %v364_v36 = vpop.permute.xlu0 %363  ;;  %522 = vmatprep.subr.mxu0 %v471_v32 }
 0x133   :  { %451 = vst [vmem:[#allocation3 + $0x40] sm:$0xf] %v447_v35  ;;  %v368_v37 = vsel %vm193_vm2, %v364_v36, %v366_v2  ;;  %523 = vmatpush1.msra.mxu0 %v470_v33  ;;  %v477_v56 = vld [vmem:[#allocation3 + $0x60] sm:$0xff] }
 0x134   :  { %372 = vst [vmem:[#allocation3 + $0x78] sm:$0xf] %v368_v37 }
 0x135   :  { %v406_v38 = vpop.permute.xlu1 %405 }
 0x136   :  { %v411_v39 = vsel %vm151_vm5, %v406_v38, %v408_v10  ;;  %v163_v13 = vpop.permute.xlu0 %162 }
 0x137   :  { %415 = vst [vmem:[#allocation3 + $0xd8] sm:$0xf] %v411_v39  ;;  %v167_v40 = vsel %vm166_vm1, %v937_v58, %v163_v13  ;;  %v168_v41 = vsel %vm166_vm1, %v163_v13, %v165_v8  ;;  %v467_v42 = vld [vmem:[#allocation3 + $0x38] sm:$0xff] }
 0x138   :  { %v466_v43 = vld [vmem:[#allocation3 + $0xf8] sm:$0xff]  ;;  %171 = vst [vmem:[#allocation3 + $0x80] sm:$0xf] %v167_v40  ;;  %172 = vst [vmem:[#allocation3 + $0x110] sm:$0xf] %v168_v41  ;;  %524 = vmatprep.subr.mxu0 %v467_v42 }
 0x139   :  { %v387_v44 = vpop.permute.xlu1 %386  ;;  %525 = vmatpush1.msra.mxu0 %v466_v43 }
 0x13a   :  { %v392_v46 = vsel %vm178_vm3, %v387_v44, %v389_v24  ;;  %v345_v47 = vpop.permute.xlu0 %344  ;;  %v488_v48 = vld [vmem:[#allocation3 + $0x40] sm:$0xff] }
 0x13b   :  { %396 = vst [vmem:[#allocation3 + $0xe0] sm:$0xf] %v392_v46  ;;  %v349_v49 = vsel %vm166_vm1, %v345_v47, %v347_v15  ;;  %586 = vmatpush1.msra.mxu1 %v488_v48  ;;  %v469_v4 = vld [vmem:[#allocation3 + $0x78] sm:$0xff] }
 0x13c   :  { %353 = vst [vmem:[#allocation3 + $0x98] sm:$0xf] %v349_v49  ;;  %587 = vmatprep.subr.mxu1 %v485_v45 }
 0x13d   :  { %v362_v22 = vpop.permute.xlu1 %361  ;;  %588 = vmatpush1.msra.mxu1 %v484_v19 }
 0x13e   :  { %v367_v51 = vsel %vm193_vm2, %v362_v22, %v364_v36  ;;  %589 = vmatprep.subr.mxu1 %v481_v50  ;;  %v117_v52 = vpop.permute.xlu0 %116  ;;  %v480_v53 = vld [vmem:[#allocation3 + $0xd8] sm:$0xff] }
 0x13f   :  { %371 = vst [vmem:[#allocation3 + $0x8] sm:$0xf] %v367_v51  ;;  %v122_v54 = vsel %vm120_vm0, %v117_v52, %v119_v23  ;;  %590 = vmatpush1.msra.mxu1 %v480_v53  ;;  %v463_v55 = vld [vmem:[#allocation3 + $0x110] sm:$0xff]  ;;  %v462_v57 = vld [vmem:[#allocation3 + $0x80] sm:$0xff] }
 0x140   :  { %126 = vst [vmem:[#allocation3 + $0xd0] sm:$0xf] %v122_v54  ;;  %526 = vmatprep.subr.mxu0 %v463_v55  ;;  %591 = vmatprep.subr.mxu1 %v477_v56 }
 0x141   :  { %v343_v58 = vpop.permute.xlu1 %342  ;;  %527 = vmatpush1.msra.mxu0 %v462_v57 }
 0x142   :  { %v348_v61 = vsel %vm166_vm1, %v343_v58, %v345_v47  ;;  %528 = vmatprep.subr.mxu0 %v459_v59  ;;  %v309_v62 = vpop.permute.xlu0 %308  ;;  %v476_v0 = vld [vmem:[#allocation3 + $0xe0] sm:$0xff] }
 0x143   :  { %352 = vst [vmem:[#allocation3 + $0x118] sm:$0xf] %v348_v61  ;;  %v313_v2 = vsel %vm120_vm0, %v309_v62, %v948_v26  ;;  %529 = vmatpush1.msra.mxu0 %v458_v63  ;;  %592 = vmatpush1.msra.mxu1 %v476_v0  ;;  %v465_v10 = vld [vmem:[#allocation3 + $0x98] sm:$0xff] }
 0x144   :  { %317 = vst [vmem:[#allocation3 + $0x48] sm:$0xf] %v313_v2  ;;  %593 = vmatprep.subr.mxu1 %v473_v60 }
 0x145   :  { %v307_v3 = vpop.permute.xlu1 %306  ;;  %594 = vmatpush1.msra.mxu1 %v472_v1 }
 0x146   :  { %v312_v5 = vsel %vm120_vm0, %v307_v3, %v309_v62  ;;  %595 = vmatprep.subr.mxu1 %v469_v4  ;;  %v115_v6 = vpop.permute.xlu0 %114  ;;  %v468_v7 = vld [vmem:[#allocation3 + $0x8] sm:$0xff] }
 0x147   :  { %316 = vst [vmem:[#allocation3 + $0x10] sm:$0xf] %v312_v5  ;;  %v121_v8 = vsel %vm120_vm0, %v115_v6, %v117_v52  ;;  %596 = vmatpush1.msra.mxu1 %v468_v7  ;;  %v455_v9 = vld [vmem:[#allocation3 + $0xd0] sm:$0xff] }
 0x148   :  { %125 = vst [vmem:[#allocation3 + $0xb0] sm:$0xf] %v121_v8  ;;  %530 = vmatprep.subr.mxu0 %v455_v9  ;;  %597 = vmatprep.subr.mxu1 %v465_v10 }
 0x14a   :  { %v464_v11 = vld [vmem:[#allocation3 + $0x118] sm:$0xff] }
 0x14b   :  { %598 = vmatpush1.msra.mxu1 %v464_v11  ;;  %v457_v15 = vld [vmem:[#allocation3 + $0x48] sm:$0xff] }
 0x14c   :  { %599 = vmatprep.subr.mxu1 %v461_v12 }
 0x14d   :  { %600 = vmatpush1.msra.mxu1 %v460_v14 }
 0x14e   :  { %601 = vmatprep.subr.mxu1 %v457_v15  ;;  %v456_v17 = vld [vmem:[#allocation3 + $0x10] sm:$0xff] }
 0x14f   :  { %602 = vmatpush1.msra.mxu1 %v456_v17  ;;  %v454_v18 = vld [vmem:[#allocation3 + $0xb0] sm:$0xff] }
 0x150   :  { %531 = vmatpush1.msra.mxu0 %v454_v18  ;;  %666 = vmatmul.mubr.msk.f32.vlgmr.msra.gmra.mxu1 %vm496_vm8, %v453_v16 }
 0x151   :  { %665 = vmatmul.mubr.msk.f32.vlgmr.msra.gmra.mxu0 %vm496_vm8, %v453_v16 }
 0x153   :  { %v494_v20 = vpop.permute.xlu0 %493 }
 0x210   :  { %v637_v21 = vpop.f32.mrf.mxu1 }
 0x211   :  { %v566_v23 = vpop.f32.mrf.mxu0  ;;  %v638_v24 = vadd.f32 %v637_v21, %v494_v20 }
 0x212   :  { %v567_v25 = vadd.f32 %v566_v23, %v494_v20  ;;  %v639_v26 = vpop.f32.mrf.mxu1 }
 0x213   :  { %645 = vst [vmem:[#allocation7 + $0x10] sm:$0xff] %v638_v24  ;;  %v640_v27 = vadd.f32 %v639_v26, %v494_v20  ;;  %v568_v28 = vpop.f32.mrf.mxu0 }
 0x214   :  { %642 = vst [vmem:[#allocation7] sm:$0xff] %v567_v25  ;;  %v569_v29 = vadd.f32 %v568_v28, %v494_v20 }
 0x215   :  { %646 = vst [vmem:[#allocation7 + $0x18] sm:$0xff] %v640_v27 }
 0x216   :  { %643 = vst [vmem:[#allocation7 + $0x8] sm:$0xff] %v569_v29 }
 0x217   :  { %718 = shalt.err (!%p715_p9)
}
 0x218   :  { %s745_s11 = smov 256  }
 0x219   :  { %658 = dma.vmem_to_hbm [thread:$0]  %s653_s10, 512, %s978_s4, [#allocation6], %s745_s11, %s745_s11, %s742_s5  }
 0x21a   :  { %729 = dma.done.wait [#allocation6], 512  }
 0x21b   :  { %730 = vsyncadd [#allocation6], 4294966784 }
 0x21c   :  { %662 = vsyncpa [#allocation5], 1 }
 0x21d   :  { %663 = vsyncpa [#allocation6], 1 }

</bundles_post_ra>
